<compile_context>
chip_gen: v7x
topology: tpu7x:2x2x1
jax: 0.10.0
libtpu: 0.0.40
codegen_flags: <defaults>
</compile_context>

<pallas_src>
import functools

import jax
import jax.numpy as jnp
from jax import lax
from jax.experimental import pallas as pl
from jax.experimental.pallas import tpu as pltpu


def _round_up(x, m):
    return ((x + m - 1) // m) * m


def _quantizer_kernel(logits_ref, w_ref, q_ref, idx_ref, *, relax, G, K):
    """One row-tile.

    logits_ref: (tn, G*K)   packed logits (r logical rows x M groups per physical row)
    w_ref:      (G*K, G*D)  block-diagonal embedding matrix (f32, pre-cast in wrapper)
    q_ref:      (tn, G*D)   packed quantized output (G*D == 128 lanes in the fast path)
    idx_ref:    (tn, G)     packed encoding indices (int32)
    """
    x = logits_ref[...].astype(jnp.float32)                 # VPU cast; inputs may be bf16
    tn = x.shape[0]
    lane = lax.broadcasted_iota(jnp.int32, x.shape, 1)       # global lane index 0..G*K-1
    col = lax.broadcasted_iota(jnp.int32, (tn, G), 1)        # idx column index 0..G-1

    idx_tile = jnp.zeros((tn, G), dtype=jnp.int32)
    if relax:
        # Subtracting the per-row *global* max shifts every lane of each K-group by
        # the same constant, so every per-group softmax is unchanged and stays stable.
        row_max = jnp.max(x, axis=-1, keepdims=True)
        e = jnp.exp(x - row_max)
        inv = jnp.zeros_like(e)                              # per-lane 1/group_sum
    else:
        z = jnp.zeros_like(x)                                # packed one-hot, built in-register

    for g in range(G):                                       # G is small & static: unrolled
        xg = x[:, g * K:(g + 1) * K]                         # (tn, K)
        # argmax tie-break: first maximal index (torch tie order unspecified).
        ig = jnp.argmax(xg, axis=-1).astype(jnp.int32)[:, None]   # (tn, 1)
        idx_tile = jnp.where(col == g, ig, idx_tile)
        if relax:
            sg = jnp.sum(e[:, g * K:(g + 1) * K], axis=-1, keepdims=True)
            rg = pl.reciprocal(sg, approx=True)              # EUP slot
            inv = jnp.where((lane >= g * K) & (lane < (g + 1) * K), rg, inv)
        else:
            # one-hot placed directly at its packed lane position (no per-group stores)
            z = jnp.where(lane == ig + g * K, 1.0, z)

    if relax:
        z = e * inv                                          # packed softmax weights

    idx_ref[...] = idx_tile                                  # single store for all indices
    # single block-diagonal matmul + single dense lane-wide q store
    q = jnp.dot(z, w_ref[...], preferred_element_type=jnp.float32)
    q_ref[...] = q.astype(q_ref.dtype)


def hard_em_quantize(logits, embeddings, *, relax=False, tn_max=256, target_steps=8):
    """
    logits:     (bsz, T, M*K) or (bsz, M*K)   (f32 or bf16; bf16 halves HBM reads)
    embeddings: (M, K, D)
    Returns dict matching the PyTorch module's forward (dense / non-packed case).
    """
    M, K, D = embeddings.shape
    in_shape = logits.shape
    assert in_shape[-1] == M * K
    has_seq = logits.ndim == 3
    bsz = in_shape[0]

    flat = logits.reshape(-1, M * K)                         # free reshape, no transpose
    N = flat.shape[0]

    # Row-pack factor: fold r logical rows per physical row so the quantized output
    # block is r*M*D == 128 lanes wide (fully dense, unmasked stores).
    md = M * D
    r_max = 128 // md if (0 < md <= 128 and 128 % md == 0) else 1

    if N < 8 * r_max:
        # Tiny input: pad up to a single full 8-row physical tile (a handful of rows,
        # negligible copy; keeps matmul/store shapes at full (8,128) granularity).
        r = r_max
        flat = jnp.pad(flat, ((0, 8 * r - N), (0, 0)))
        n_rows = 8 * r
    else:
        # Large input: never pad/copy -- drop to the largest pack factor dividing N.
        r = next(c for c in range(r_max, 0, -1) if N % c == 0)
        n_rows = N

    G = r * M
    Np = n_rows // r                                          # physical (packed) rows, >= 8
    packed = flat.reshape(Np, G * K)                          # free row-major reshape

    # Physical-row tile: multiple of 8, every block starts in-bounds, and keep enough
    # grid steps for v7x's two TensorCores / pipeline overlap (partial edge block is
    # masked by Pallas, so no jnp.pad for the tail).
    tn = min(int(tn_max), (Np // 8) * 8)
    tn = min(tn, max(8, _round_up(pl.cdiv(Np, target_steps), 8)))
    tn = max(8, (tn // 8) * 8)
    grid = pl.cdiv(Np, tn)

    # Block-diagonal embedding (G*K, G*D), pre-cast to f32 (cast hoisted out of the kernel).
    emb_f32 = embeddings.astype(jnp.float32)
    blocks = jnp.tile(emb_f32, (r, 1, 1))                     # (G, K, D); group g uses emb[g % M]
    eye = jnp.eye(G, dtype=jnp.float32)
    w_blockdiag = (blocks[:, :, None, :] * eye[:, None, :, None]).reshape(G * K, G * D)

    q_dtype = jnp.result_type(logits.dtype, embeddings.dtype)
    kernel = functools.partial(_quantizer_kernel, relax=relax, G=G, K=K)

    q_packed, idx_packed = pl.pallas_call(
        kernel,
        out_shape=(
            jax.ShapeDtypeStruct((Np, G * D), q_dtype),        # lane-dense quantized
            jax.ShapeDtypeStruct((Np, G), jnp.int32),          # encoding indices
        ),
        grid_spec=pltpu.PrefetchScalarGridSpec(
            num_scalar_prefetch=0,
            grid=(grid,),
            in_specs=[
                pl.BlockSpec((tn, G * K), lambda n: (n, 0)),
                pl.BlockSpec((G * K, G * D), lambda n: (0, 0)),  # tiny constant, resident
            ],
            out_specs=(
                pl.BlockSpec((tn, G * D), lambda n: (n, 0)),
                pl.BlockSpec((tn, G), lambda n: (n, 0)),
            ),
        ),
        compiler_params=pltpu.CompilerParams(
            # single row axis: parallel -> shards across v7x's two TensorCores
            dimension_semantics=("parallel",)),
    )(packed, w_blockdiag)

    # Free unpack of the lane-packed outputs + tail slice (only non-trivial for tiny pads).
    quantized_stack = q_packed.reshape(n_rows, M, D)[:N]
    encoding_indices = idx_packed.reshape(n_rows, M)[:N]       # int32 (torch uses int64)

    if has_seq:
        T = in_shape[1]
        quantized_stack = quantized_stack.reshape(bsz, T, M, D)
        quantized = quantized_stack.reshape(bsz, T, M * D)
        encoding_indices = encoding_indices.reshape(bsz, T, M)
    else:
        quantized_stack = quantized_stack.reshape(bsz, M, D)
        quantized = quantized_stack.reshape(bsz, M * D)
        encoding_indices = encoding_indices.reshape(bsz, M)

    # TODO(synk): PackedSequenceUtil (padded-sequence re-packing) path is host-side glue
    # with no kernel content; only the dense (non-packed) path is implemented here.
    return {
        "quantized": quantized,
        "quantized_stack": quantized_stack,
        "encoding_indices": encoding_indices,
    }


def _reference(logits, embeddings, relax=False):
    M, K, D = embeddings.shape
    in_shape = logits.shape
    flat = logits.reshape(-1, M, K).astype(jnp.float32)
    idx = jnp.argmax(flat, axis=-1)                           # (N, M)
    if relax:
        z = jax.nn.softmax(flat, axis=-1)
    else:
        z = jax.nn.one_hot(idx, K, dtype=jnp.float32)         # (N, M, K)
    q = jnp.einsum("nmk,mkd->nmd", z, embeddings)             # (N, M, D)
    if logits.ndim == 3:
        bsz, T = in_shape[0], in_shape[1]
        return q.reshape(bsz, T, M * D), idx.reshape(bsz, T, M)
    return q.reshape(in_shape[0], M * D), idx.reshape(in_shape[0], M)


if __name__ == "__main__":
    # shapes consistent with the module: bsz=2, T=8, M=4 splits,
    # K=16 codes per split, D=8 dims per split -> logits (2, 8, 64)
    bsz, T, M, K, D = 2, 8, 4, 16, 8
    key = jax.random.PRNGKey(0)
    k_emb, k_log = jax.random.split(key)

    embeddings = jax.random.normal(k_emb, (M, K, D), dtype=jnp.float32)
    logits = jax.random.normal(k_log, (bsz, T, M * K), dtype=jnp.float32)

    # eval / hard one-hot path (same forward values as the straight-through path)
    out = hard_em_quantize(logits, embeddings, relax=False)
    jax.block_until_ready(out)
    q_ref, i_ref = _reference(logits, embeddings, relax=False)
    assert jnp.allclose(out["quantized"], q_ref, atol=1e-5), "quantized mismatch"
    assert jnp.array_equal(out["encoding_indices"], i_ref), "indices mismatch"
    assert out["quantized"].shape == (bsz, T, M * D)
    assert out["quantized_stack"].shape == (bsz, T, M, D)
    assert out["encoding_indices"].shape == (bsz, T, M)

    # relax=True (softmax) path; approx reciprocal on the EUP -> slightly looser tolerance
    out_r = hard_em_quantize(logits, embeddings, relax=True)
    jax.block_until_ready(out_r)
    qr_ref, _ = _reference(logits, embeddings, relax=True)
    assert jnp.allclose(out_r["quantized"], qr_ref, atol=2e-3, rtol=2e-3), "relax mismatch"

    # single-vector (bsz, M*K) case
    logits2d = logits[:, 0, :]
    out2 = hard_em_quantize(logits2d, embeddings, relax=False)
    jax.block_until_ready(out2)
    q2_ref, i2_ref = _reference(logits2d, embeddings, relax=False)
    assert jnp.allclose(out2["quantized"], q2_ref, atol=1e-5), "2d quantized mismatch"
    assert jnp.array_equal(out2["encoding_indices"], i2_ref), "2d indices mismatch"
    assert out2["quantized"].shape == (bsz, M * D)

    # larger ragged case: exercises the no-pad multi-step grid with a partial edge block
    T2 = 50   # N = 100 -> r=4, Np=25, tn=8, grid=4 (last block masked, no jnp.pad)
    logits3 = jax.random.normal(jax.random.PRNGKey(1), (bsz, T2, M * K), dtype=jnp.float32)
    out3 = hard_em_quantize(logits3, embeddings, relax=False)
    jax.block_until_ready(out3)
    q3_ref, i3_ref = _reference(logits3, embeddings, relax=False)
    assert jnp.allclose(out3["quantized"], q3_ref, atol=1e-5), "ragged quantized mismatch"
    assert jnp.array_equal(out3["encoding_indices"], i3_ref), "ragged indices mismatch"

    print("KERNEL_OK")
</pallas_src>

<mosaic_0001>
module attributes {stable_mosaic.version = 11 : i64} {
  func.func @_quantizer_kernel(%arg0: i32, %arg1: memref<8x256xf32, #tpu.memory_space<vmem>>, %arg2: memref<256x128xf32, #tpu.memory_space<vmem>>, %arg3: memref<8x128xf32, #tpu.memory_space<vmem>>, %arg4: memref<8x16xi32, #tpu.memory_space<vmem>>) attributes {dimension_semantics = [#tpu.dimension_semantics<parallel>], iteration_bounds = array<i64: 1>, scalar_prefetch = 0 : i64, scratch_operands = 0 : i64, tpu.core_type = #tpu.core_type<tc>, window_params = [{transform_indices = @transform_0, window_bounds = array<i64: 8, 256>}, {pipeline_mode = #tpu.pipeline_mode<synchronous>, transform_indices = @transform_1, window_bounds = array<i64: 256, 128>}, {transform_indices = @transform_2, window_bounds = array<i64: 8, 128>}, {transform_indices = @transform_3, window_bounds = array<i64: 8, 16>}]} {
    %c0 = arith.constant 0 : index
    %c0_0 = arith.constant 0 : index
    %0 = vector.load %arg1[%c0, %c0_0] : memref<8x256xf32, #tpu.memory_space<vmem>>, vector<8x256xf32>
    %1 = tpu.iota {dimensions = array<i32: 1>} : vector<8x256xi32>
    %2 = tpu.iota {dimensions = array<i32: 1>} : vector<8x16xi32>
    %c0_i32 = arith.constant 0 : i32
    %3 = vector.broadcast %c0_i32 : i32 to vector<8x16xi32>
    %cst = arith.constant 0.000000e+00 : f32
    %4 = vector.broadcast %cst : f32 to vector<8x256xf32>
    %5 = vector.extract_strided_slice %0 {offsets = [0, 0], sizes = [8, 16], strides = [1, 1]} : vector<8x256xf32> to vector<8x16xf32>
    %6 = tpu.reduce_index %5 {axis = 1 : i32, kind = #tpu.reduction_kind<arg_max>} : vector<8x16xf32> -> vector<8xi32>
    %7 = vector.shape_cast %6 : vector<8xi32> to vector<8x1xi32>
    %c0_i32_1 = arith.constant 0 : i32
    %8 = vector.broadcast %c0_i32_1 : i32 to vector<8x16xi32>
    %9 = arith.cmpi eq, %2, %8 : vector<8x16xi32>
    %10 = vector.shape_cast %7 : vector<8x1xi32> to vector<8x1xi32>
    %11 = vector.broadcast %10 : vector<8x1xi32> to vector<8x16xi32>
    %12 = arith.select %9, %11, %3 : vector<8x16xi1>, vector<8x16xi32>
    %c0_i32_2 = arith.constant 0 : i32
    %13 = vector.broadcast %c0_i32_2 : i32 to vector<8x1xi32>
    %14 = arith.addi %7, %13 : vector<8x1xi32>
    %15 = vector.broadcast %14 : vector<8x1xi32> to vector<8x256xi32>
    %16 = arith.cmpi eq, %1, %15 : vector<8x256xi32>
    %cst_3 = arith.constant 1.000000e+00 : f32
    %17 = vector.broadcast %cst_3 : f32 to vector<8x256xf32>
    %18 = arith.select %16, %17, %4 : vector<8x256xi1>, vector<8x256xf32>
    %19 = vector.extract_strided_slice %0 {offsets = [0, 16], sizes = [8, 16], strides = [1, 1]} : vector<8x256xf32> to vector<8x16xf32>
    %20 = tpu.reduce_index %19 {axis = 1 : i32, kind = #tpu.reduction_kind<arg_max>} : vector<8x16xf32> -> vector<8xi32>
    %21 = vector.shape_cast %20 : vector<8xi32> to vector<8x1xi32>
    %c1_i32 = arith.constant 1 : i32
    %22 = vector.broadcast %c1_i32 : i32 to vector<8x16xi32>
    %23 = arith.cmpi eq, %2, %22 : vector<8x16xi32>
    %24 = vector.shape_cast %21 : vector<8x1xi32> to vector<8x1xi32>
    %25 = vector.broadcast %24 : vector<8x1xi32> to vector<8x16xi32>
    %26 = arith.select %23, %25, %12 : vector<8x16xi1>, vector<8x16xi32>
    %c16_i32 = arith.constant 16 : i32
    %27 = vector.broadcast %c16_i32 : i32 to vector<8x1xi32>
    %28 = arith.addi %21, %27 : vector<8x1xi32>
    %29 = vector.broadcast %28 : vector<8x1xi32> to vector<8x256xi32>
    %30 = arith.cmpi eq, %1, %29 : vector<8x256xi32>
    %cst_4 = arith.constant 1.000000e+00 : f32
    %31 = vector.broadcast %cst_4 : f32 to vector<8x256xf32>
    %32 = arith.select %30, %31, %18 : vector<8x256xi1>, vector<8x256xf32>
    %33 = vector.extract_strided_slice %0 {offsets = [0, 32], sizes = [8, 16], strides = [1, 1]} : vector<8x256xf32> to vector<8x16xf32>
    %34 = tpu.reduce_index %33 {axis = 1 : i32, kind = #tpu.reduction_kind<arg_max>} : vector<8x16xf32> -> vector<8xi32>
    %35 = vector.shape_cast %34 : vector<8xi32> to vector<8x1xi32>
    %c2_i32 = arith.constant 2 : i32
    %36 = vector.broadcast %c2_i32 : i32 to vector<8x16xi32>
    %37 = arith.cmpi eq, %2, %36 : vector<8x16xi32>
    %38 = vector.shape_cast %35 : vector<8x1xi32> to vector<8x1xi32>
    %39 = vector.broadcast %38 : vector<8x1xi32> to vector<8x16xi32>
    %40 = arith.select %37, %39, %26 : vector<8x16xi1>, vector<8x16xi32>
    %c32_i32 = arith.constant 32 : i32
    %41 = vector.broadcast %c32_i32 : i32 to vector<8x1xi32>
    %42 = arith.addi %35, %41 : vector<8x1xi32>
    %43 = vector.broadcast %42 : vector<8x1xi32> to vector<8x256xi32>
    %44 = arith.cmpi eq, %1, %43 : vector<8x256xi32>
    %cst_5 = arith.constant 1.000000e+00 : f32
    %45 = vector.broadcast %cst_5 : f32 to vector<8x256xf32>
    %46 = arith.select %44, %45, %32 : vector<8x256xi1>, vector<8x256xf32>
    %47 = vector.extract_strided_slice %0 {offsets = [0, 48], sizes = [8, 16], strides = [1, 1]} : vector<8x256xf32> to vector<8x16xf32>
    %48 = tpu.reduce_index %47 {axis = 1 : i32, kind = #tpu.reduction_kind<arg_max>} : vector<8x16xf32> -> vector<8xi32>
    %49 = vector.shape_cast %48 : vector<8xi32> to vector<8x1xi32>
    %c3_i32 = arith.constant 3 : i32
    %50 = vector.broadcast %c3_i32 : i32 to vector<8x16xi32>
    %51 = arith.cmpi eq, %2, %50 : vector<8x16xi32>
    %52 = vector.shape_cast %49 : vector<8x1xi32> to vector<8x1xi32>
    %53 = vector.broadcast %52 : vector<8x1xi32> to vector<8x16xi32>
    %54 = arith.select %51, %53, %40 : vector<8x16xi1>, vector<8x16xi32>
    %c48_i32 = arith.constant 48 : i32
    %55 = vector.broadcast %c48_i32 : i32 to vector<8x1xi32>
    %56 = arith.addi %49, %55 : vector<8x1xi32>
    %57 = vector.broadcast %56 : vector<8x1xi32> to vector<8x256xi32>
    %58 = arith.cmpi eq, %1, %57 : vector<8x256xi32>
    %cst_6 = arith.constant 1.000000e+00 : f32
    %59 = vector.broadcast %cst_6 : f32 to vector<8x256xf32>
    %60 = arith.select %58, %59, %46 : vector<8x256xi1>, vector<8x256xf32>
    %61 = vector.extract_strided_slice %0 {offsets = [0, 64], sizes = [8, 16], strides = [1, 1]} : vector<8x256xf32> to vector<8x16xf32>
    %62 = tpu.reduce_index %61 {axis = 1 : i32, kind = #tpu.reduction_kind<arg_max>} : vector<8x16xf32> -> vector<8xi32>
    %63 = vector.shape_cast %62 : vector<8xi32> to vector<8x1xi32>
    %c4_i32 = arith.constant 4 : i32
    %64 = vector.broadcast %c4_i32 : i32 to vector<8x16xi32>
    %65 = arith.cmpi eq, %2, %64 : vector<8x16xi32>
    %66 = vector.shape_cast %63 : vector<8x1xi32> to vector<8x1xi32>
    %67 = vector.broadcast %66 : vector<8x1xi32> to vector<8x16xi32>
    %68 = arith.select %65, %67, %54 : vector<8x16xi1>, vector<8x16xi32>
    %c64_i32 = arith.constant 64 : i32
    %69 = vector.broadcast %c64_i32 : i32 to vector<8x1xi32>
    %70 = arith.addi %63, %69 : vector<8x1xi32>
    %71 = vector.broadcast %70 : vector<8x1xi32> to vector<8x256xi32>
    %72 = arith.cmpi eq, %1, %71 : vector<8x256xi32>
    %cst_7 = arith.constant 1.000000e+00 : f32
    %73 = vector.broadcast %cst_7 : f32 to vector<8x256xf32>
    %74 = arith.select %72, %73, %60 : vector<8x256xi1>, vector<8x256xf32>
    %75 = vector.extract_strided_slice %0 {offsets = [0, 80], sizes = [8, 16], strides = [1, 1]} : vector<8x256xf32> to vector<8x16xf32>
    %76 = tpu.reduce_index %75 {axis = 1 : i32, kind = #tpu.reduction_kind<arg_max>} : vector<8x16xf32> -> vector<8xi32>
    %77 = vector.shape_cast %76 : vector<8xi32> to vector<8x1xi32>
    %c5_i32 = arith.constant 5 : i32
    %78 = vector.broadcast %c5_i32 : i32 to vector<8x16xi32>
    %79 = arith.cmpi eq, %2, %78 : vector<8x16xi32>
    %80 = vector.shape_cast %77 : vector<8x1xi32> to vector<8x1xi32>
    %81 = vector.broadcast %80 : vector<8x1xi32> to vector<8x16xi32>
    %82 = arith.select %79, %81, %68 : vector<8x16xi1>, vector<8x16xi32>
    %c80_i32 = arith.constant 80 : i32
    %83 = vector.broadcast %c80_i32 : i32 to vector<8x1xi32>
    %84 = arith.addi %77, %83 : vector<8x1xi32>
    %85 = vector.broadcast %84 : vector<8x1xi32> to vector<8x256xi32>
    %86 = arith.cmpi eq, %1, %85 : vector<8x256xi32>
    %cst_8 = arith.constant 1.000000e+00 : f32
    %87 = vector.broadcast %cst_8 : f32 to vector<8x256xf32>
    %88 = arith.select %86, %87, %74 : vector<8x256xi1>, vector<8x256xf32>
    %89 = vector.extract_strided_slice %0 {offsets = [0, 96], sizes = [8, 16], strides = [1, 1]} : vector<8x256xf32> to vector<8x16xf32>
    %90 = tpu.reduce_index %89 {axis = 1 : i32, kind = #tpu.reduction_kind<arg_max>} : vector<8x16xf32> -> vector<8xi32>
    %91 = vector.shape_cast %90 : vector<8xi32> to vector<8x1xi32>
    %c6_i32 = arith.constant 6 : i32
    %92 = vector.broadcast %c6_i32 : i32 to vector<8x16xi32>
    %93 = arith.cmpi eq, %2, %92 : vector<8x16xi32>
    %94 = vector.shape_cast %91 : vector<8x1xi32> to vector<8x1xi32>
    %95 = vector.broadcast %94 : vector<8x1xi32> to vector<8x16xi32>
    %96 = arith.select %93, %95, %82 : vector<8x16xi1>, vector<8x16xi32>
    %c96_i32 = arith.constant 96 : i32
    %97 = vector.broadcast %c96_i32 : i32 to vector<8x1xi32>
    %98 = arith.addi %91, %97 : vector<8x1xi32>
    %99 = vector.broadcast %98 : vector<8x1xi32> to vector<8x256xi32>
    %100 = arith.cmpi eq, %1, %99 : vector<8x256xi32>
    %cst_9 = arith.constant 1.000000e+00 : f32
    %101 = vector.broadcast %cst_9 : f32 to vector<8x256xf32>
    %102 = arith.select %100, %101, %88 : vector<8x256xi1>, vector<8x256xf32>
    %103 = vector.extract_strided_slice %0 {offsets = [0, 112], sizes = [8, 16], strides = [1, 1]} : vector<8x256xf32> to vector<8x16xf32>
    %104 = tpu.reduce_index %103 {axis = 1 : i32, kind = #tpu.reduction_kind<arg_max>} : vector<8x16xf32> -> vector<8xi32>
    %105 = vector.shape_cast %104 : vector<8xi32> to vector<8x1xi32>
    %c7_i32 = arith.constant 7 : i32
    %106 = vector.broadcast %c7_i32 : i32 to vector<8x16xi32>
    %107 = arith.cmpi eq, %2, %106 : vector<8x16xi32>
    %108 = vector.shape_cast %105 : vector<8x1xi32> to vector<8x1xi32>
    %109 = vector.broadcast %108 : vector<8x1xi32> to vector<8x16xi32>
    %110 = arith.select %107, %109, %96 : vector<8x16xi1>, vector<8x16xi32>
    %c112_i32 = arith.constant 112 : i32
    %111 = vector.broadcast %c112_i32 : i32 to vector<8x1xi32>
    %112 = arith.addi %105, %111 : vector<8x1xi32>
    %113 = vector.broadcast %112 : vector<8x1xi32> to vector<8x256xi32>
    %114 = arith.cmpi eq, %1, %113 : vector<8x256xi32>
    %cst_10 = arith.constant 1.000000e+00 : f32
    %115 = vector.broadcast %cst_10 : f32 to vector<8x256xf32>
    %116 = arith.select %114, %115, %102 : vector<8x256xi1>, vector<8x256xf32>
    %117 = vector.extract_strided_slice %0 {offsets = [0, 128], sizes = [8, 16], strides = [1, 1]} : vector<8x256xf32> to vector<8x16xf32>
    %118 = tpu.reduce_index %117 {axis = 1 : i32, kind = #tpu.reduction_kind<arg_max>} : vector<8x16xf32> -> vector<8xi32>
    %119 = vector.shape_cast %118 : vector<8xi32> to vector<8x1xi32>
    %c8_i32 = arith.constant 8 : i32
    %120 = vector.broadcast %c8_i32 : i32 to vector<8x16xi32>
    %121 = arith.cmpi eq, %2, %120 : vector<8x16xi32>
    %122 = vector.shape_cast %119 : vector<8x1xi32> to vector<8x1xi32>
    %123 = vector.broadcast %122 : vector<8x1xi32> to vector<8x16xi32>
    %124 = arith.select %121, %123, %110 : vector<8x16xi1>, vector<8x16xi32>
    %c128_i32 = arith.constant 128 : i32
    %125 = vector.broadcast %c128_i32 : i32 to vector<8x1xi32>
    %126 = arith.addi %119, %125 : vector<8x1xi32>
    %127 = vector.broadcast %126 : vector<8x1xi32> to vector<8x256xi32>
    %128 = arith.cmpi eq, %1, %127 : vector<8x256xi32>
    %cst_11 = arith.constant 1.000000e+00 : f32
    %129 = vector.broadcast %cst_11 : f32 to vector<8x256xf32>
    %130 = arith.select %128, %129, %116 : vector<8x256xi1>, vector<8x256xf32>
    %131 = vector.extract_strided_slice %0 {offsets = [0, 144], sizes = [8, 16], strides = [1, 1]} : vector<8x256xf32> to vector<8x16xf32>
    %132 = tpu.reduce_index %131 {axis = 1 : i32, kind = #tpu.reduction_kind<arg_max>} : vector<8x16xf32> -> vector<8xi32>
    %133 = vector.shape_cast %132 : vector<8xi32> to vector<8x1xi32>
    %c9_i32 = arith.constant 9 : i32
    %134 = vector.broadcast %c9_i32 : i32 to vector<8x16xi32>
    %135 = arith.cmpi eq, %2, %134 : vector<8x16xi32>
    %136 = vector.shape_cast %133 : vector<8x1xi32> to vector<8x1xi32>
    %137 = vector.broadcast %136 : vector<8x1xi32> to vector<8x16xi32>
    %138 = arith.select %135, %137, %124 : vector<8x16xi1>, vector<8x16xi32>
    %c144_i32 = arith.constant 144 : i32
    %139 = vector.broadcast %c144_i32 : i32 to vector<8x1xi32>
    %140 = arith.addi %133, %139 : vector<8x1xi32>
    %141 = vector.broadcast %140 : vector<8x1xi32> to vector<8x256xi32>
    %142 = arith.cmpi eq, %1, %141 : vector<8x256xi32>
    %cst_12 = arith.constant 1.000000e+00 : f32
    %143 = vector.broadcast %cst_12 : f32 to vector<8x256xf32>
    %144 = arith.select %142, %143, %130 : vector<8x256xi1>, vector<8x256xf32>
    %145 = vector.extract_strided_slice %0 {offsets = [0, 160], sizes = [8, 16], strides = [1, 1]} : vector<8x256xf32> to vector<8x16xf32>
    %146 = tpu.reduce_index %145 {axis = 1 : i32, kind = #tpu.reduction_kind<arg_max>} : vector<8x16xf32> -> vector<8xi32>
    %147 = vector.shape_cast %146 : vector<8xi32> to vector<8x1xi32>
    %c10_i32 = arith.constant 10 : i32
    %148 = vector.broadcast %c10_i32 : i32 to vector<8x16xi32>
    %149 = arith.cmpi eq, %2, %148 : vector<8x16xi32>
    %150 = vector.shape_cast %147 : vector<8x1xi32> to vector<8x1xi32>
    %151 = vector.broadcast %150 : vector<8x1xi32> to vector<8x16xi32>
    %152 = arith.select %149, %151, %138 : vector<8x16xi1>, vector<8x16xi32>
    %c160_i32 = arith.constant 160 : i32
    %153 = vector.broadcast %c160_i32 : i32 to vector<8x1xi32>
    %154 = arith.addi %147, %153 : vector<8x1xi32>
    %155 = vector.broadcast %154 : vector<8x1xi32> to vector<8x256xi32>
    %156 = arith.cmpi eq, %1, %155 : vector<8x256xi32>
    %cst_13 = arith.constant 1.000000e+00 : f32
    %157 = vector.broadcast %cst_13 : f32 to vector<8x256xf32>
    %158 = arith.select %156, %157, %144 : vector<8x256xi1>, vector<8x256xf32>
    %159 = vector.extract_strided_slice %0 {offsets = [0, 176], sizes = [8, 16], strides = [1, 1]} : vector<8x256xf32> to vector<8x16xf32>
    %160 = tpu.reduce_index %159 {axis = 1 : i32, kind = #tpu.reduction_kind<arg_max>} : vector<8x16xf32> -> vector<8xi32>
    %161 = vector.shape_cast %160 : vector<8xi32> to vector<8x1xi32>
    %c11_i32 = arith.constant 11 : i32
    %162 = vector.broadcast %c11_i32 : i32 to vector<8x16xi32>
    %163 = arith.cmpi eq, %2, %162 : vector<8x16xi32>
    %164 = vector.shape_cast %161 : vector<8x1xi32> to vector<8x1xi32>
    %165 = vector.broadcast %164 : vector<8x1xi32> to vector<8x16xi32>
    %166 = arith.select %163, %165, %152 : vector<8x16xi1>, vector<8x16xi32>
    %c176_i32 = arith.constant 176 : i32
    %167 = vector.broadcast %c176_i32 : i32 to vector<8x1xi32>
    %168 = arith.addi %161, %167 : vector<8x1xi32>
    %169 = vector.broadcast %168 : vector<8x1xi32> to vector<8x256xi32>
    %170 = arith.cmpi eq, %1, %169 : vector<8x256xi32>
    %cst_14 = arith.constant 1.000000e+00 : f32
    %171 = vector.broadcast %cst_14 : f32 to vector<8x256xf32>
    %172 = arith.select %170, %171, %158 : vector<8x256xi1>, vector<8x256xf32>
    %173 = vector.extract_strided_slice %0 {offsets = [0, 192], sizes = [8, 16], strides = [1, 1]} : vector<8x256xf32> to vector<8x16xf32>
    %174 = tpu.reduce_index %173 {axis = 1 : i32, kind = #tpu.reduction_kind<arg_max>} : vector<8x16xf32> -> vector<8xi32>
    %175 = vector.shape_cast %174 : vector<8xi32> to vector<8x1xi32>
    %c12_i32 = arith.constant 12 : i32
    %176 = vector.broadcast %c12_i32 : i32 to vector<8x16xi32>
    %177 = arith.cmpi eq, %2, %176 : vector<8x16xi32>
    %178 = vector.shape_cast %175 : vector<8x1xi32> to vector<8x1xi32>
    %179 = vector.broadcast %178 : vector<8x1xi32> to vector<8x16xi32>
    %180 = arith.select %177, %179, %166 : vector<8x16xi1>, vector<8x16xi32>
    %c192_i32 = arith.constant 192 : i32
    %181 = vector.broadcast %c192_i32 : i32 to vector<8x1xi32>
    %182 = arith.addi %175, %181 : vector<8x1xi32>
    %183 = vector.broadcast %182 : vector<8x1xi32> to vector<8x256xi32>
    %184 = arith.cmpi eq, %1, %183 : vector<8x256xi32>
    %cst_15 = arith.constant 1.000000e+00 : f32
    %185 = vector.broadcast %cst_15 : f32 to vector<8x256xf32>
    %186 = arith.select %184, %185, %172 : vector<8x256xi1>, vector<8x256xf32>
    %187 = vector.extract_strided_slice %0 {offsets = [0, 208], sizes = [8, 16], strides = [1, 1]} : vector<8x256xf32> to vector<8x16xf32>
    %188 = tpu.reduce_index %187 {axis = 1 : i32, kind = #tpu.reduction_kind<arg_max>} : vector<8x16xf32> -> vector<8xi32>
    %189 = vector.shape_cast %188 : vector<8xi32> to vector<8x1xi32>
    %c13_i32 = arith.constant 13 : i32
    %190 = vector.broadcast %c13_i32 : i32 to vector<8x16xi32>
    %191 = arith.cmpi eq, %2, %190 : vector<8x16xi32>
    %192 = vector.shape_cast %189 : vector<8x1xi32> to vector<8x1xi32>
    %193 = vector.broadcast %192 : vector<8x1xi32> to vector<8x16xi32>
    %194 = arith.select %191, %193, %180 : vector<8x16xi1>, vector<8x16xi32>
    %c208_i32 = arith.constant 208 : i32
    %195 = vector.broadcast %c208_i32 : i32 to vector<8x1xi32>
    %196 = arith.addi %189, %195 : vector<8x1xi32>
    %197 = vector.broadcast %196 : vector<8x1xi32> to vector<8x256xi32>
    %198 = arith.cmpi eq, %1, %197 : vector<8x256xi32>
    %cst_16 = arith.constant 1.000000e+00 : f32
    %199 = vector.broadcast %cst_16 : f32 to vector<8x256xf32>
    %200 = arith.select %198, %199, %186 : vector<8x256xi1>, vector<8x256xf32>
    %201 = vector.extract_strided_slice %0 {offsets = [0, 224], sizes = [8, 16], strides = [1, 1]} : vector<8x256xf32> to vector<8x16xf32>
    %202 = tpu.reduce_index %201 {axis = 1 : i32, kind = #tpu.reduction_kind<arg_max>} : vector<8x16xf32> -> vector<8xi32>
    %203 = vector.shape_cast %202 : vector<8xi32> to vector<8x1xi32>
    %c14_i32 = arith.constant 14 : i32
    %204 = vector.broadcast %c14_i32 : i32 to vector<8x16xi32>
    %205 = arith.cmpi eq, %2, %204 : vector<8x16xi32>
    %206 = vector.shape_cast %203 : vector<8x1xi32> to vector<8x1xi32>
    %207 = vector.broadcast %206 : vector<8x1xi32> to vector<8x16xi32>
    %208 = arith.select %205, %207, %194 : vector<8x16xi1>, vector<8x16xi32>
    %c224_i32 = arith.constant 224 : i32
    %209 = vector.broadcast %c224_i32 : i32 to vector<8x1xi32>
    %210 = arith.addi %203, %209 : vector<8x1xi32>
    %211 = vector.broadcast %210 : vector<8x1xi32> to vector<8x256xi32>
    %212 = arith.cmpi eq, %1, %211 : vector<8x256xi32>
    %cst_17 = arith.constant 1.000000e+00 : f32
    %213 = vector.broadcast %cst_17 : f32 to vector<8x256xf32>
    %214 = arith.select %212, %213, %200 : vector<8x256xi1>, vector<8x256xf32>
    %215 = vector.extract_strided_slice %0 {offsets = [0, 240], sizes = [8, 16], strides = [1, 1]} : vector<8x256xf32> to vector<8x16xf32>
    %216 = tpu.reduce_index %215 {axis = 1 : i32, kind = #tpu.reduction_kind<arg_max>} : vector<8x16xf32> -> vector<8xi32>
    %217 = vector.shape_cast %216 : vector<8xi32> to vector<8x1xi32>
    %c15_i32 = arith.constant 15 : i32
    %218 = vector.broadcast %c15_i32 : i32 to vector<8x16xi32>
    %219 = arith.cmpi eq, %2, %218 : vector<8x16xi32>
    %220 = vector.shape_cast %217 : vector<8x1xi32> to vector<8x1xi32>
    %221 = vector.broadcast %220 : vector<8x1xi32> to vector<8x16xi32>
    %222 = arith.select %219, %221, %208 : vector<8x16xi1>, vector<8x16xi32>
    %c240_i32 = arith.constant 240 : i32
    %223 = vector.broadcast %c240_i32 : i32 to vector<8x1xi32>
    %224 = arith.addi %217, %223 : vector<8x1xi32>
    %225 = vector.broadcast %224 : vector<8x1xi32> to vector<8x256xi32>
    %226 = arith.cmpi eq, %1, %225 : vector<8x256xi32>
    %cst_18 = arith.constant 1.000000e+00 : f32
    %227 = vector.broadcast %cst_18 : f32 to vector<8x256xf32>
    %228 = arith.select %226, %227, %214 : vector<8x256xi1>, vector<8x256xf32>
    %c0_19 = arith.constant 0 : index
    %c0_20 = arith.constant 0 : index
    %229 = vector.load %arg4[%c0_19, %c0_20] : memref<8x16xi32, #tpu.memory_space<vmem>>, vector<8x16xi32>
    tpu.vector_store %arg4[%c0_19, %c0_20], %222 {strides = array<i32>} : memref<8x16xi32, #tpu.memory_space<vmem>>, vector<8x16xi32>,
    %c0_21 = arith.constant 0 : index
    %c0_22 = arith.constant 0 : index
    %230 = vector.load %arg2[%c0_21, %c0_22] : memref<256x128xf32, #tpu.memory_space<vmem>>, vector<256x128xf32>
    %cst_23 = arith.constant dense<0.000000e+00> : vector<8x128xf32>
    %231 = tpu.matmul %228, %230, %cst_23 {dimension_numbers = #tpu.dot_dimension_numbers<[1], [0], [0], [1], [0, 0, 1, 1], [], []>} : vector<8x256xf32>, vector<256x128xf32>, vector<8x128xf32> -> vector<8x128xf32>
    %c0_24 = arith.constant 0 : index
    %c0_25 = arith.constant 0 : index
    %232 = vector.load %arg3[%c0_24, %c0_25] : memref<8x128xf32, #tpu.memory_space<vmem>>, vector<8x128xf32>
    tpu.vector_store %arg3[%c0_24, %c0_25], %231 {strides = array<i32>} : memref<8x128xf32, #tpu.memory_space<vmem>>, vector<8x128xf32>,
    return
  }
  func.func @transform_0(%arg0: i32) -> (i32, i32) {
    %c0_i32 = arith.constant 0 : i32
    %c0_i32_0 = arith.constant 0 : i32
    return %arg0, %c0_i32 : i32, i32
  }
  func.func @transform_1(%arg0: i32) -> (i32, i32) {
    %c0_i32 = arith.constant 0 : i32
    %c0_i32_0 = arith.constant 0 : i32
    %c0_i32_1 = arith.constant 0 : i32
    return %c0_i32, %c0_i32_0 : i32, i32
  }
  func.func @transform_2(%arg0: i32) -> (i32, i32) {
    %c0_i32 = arith.constant 0 : i32
    %c0_i32_0 = arith.constant 0 : i32
    return %arg0, %c0_i32 : i32, i32
  }
  func.func @transform_3(%arg0: i32) -> (i32, i32) {
    %c0_i32 = arith.constant 0 : i32
    %c0_i32_0 = arith.constant 0 : i32
    return %arg0, %c0_i32 : i32, i32
  }
}

</mosaic_0001>

<bundles_post_ra>
// kernel: tpu_custom_call.1
= control target key start
LH: loop header
LB: loop body
LE: loop exit
PB: predicated region body
PF: predicated region fallthrough
CT: control target
= control target key end

     0   :  { %9 = vsyncpa [#allocation3], 0  ;;  %s753_s0 = inlined_call_operand.hbm [shape: f32[8,256], index: 0, kind: input, shape index: {}]   ;;  %s754_s1 = inlined_call_operand.hbm [shape: f32[256,128], index: 1, kind: input, shape index: {}]   ;;  %s755_s2 = inlined_call_operand.hbm [shape: f32[8,128], index: 2, kind: output, shape index: {0}]   ;;  %s756_s3 = inlined_call_operand.hbm [shape: s32[8,16], index: 3, kind: output, shape index: {1}]  }
   0x1   :  { %10 = vsyncpa [#allocation6], 0 }
   0x2   :  { %11 = vsyncpa [#allocation4], 0 }
   0x3   :  { %12 = vsyncpa [#allocation9], 0  ;;  %s561_s12 = smov [#allocation2]   ;;  %s562_s14 = smov [#allocation5]  }
   0x4   :  { %s19_s13 = sshll.u32 %s561_s12, 4  ;;  %s28_s15 = sshll.u32 %s562_s14, 4  ;;  %s20_s13 = int_to_ptr.vmem [resolvable:$true] %s19_s13  ;;  %s595_s15 = int_to_ptr.vmem [resolvable:$true] %s28_s15 }
   0x5   :  { %s465_s18 = scalar_lea.hbm %s753_s0, 256 }
   0x6   :  { %p466_p0 = scmp.ne.s32.totalorder %s753_s0, %s465_s18  ;;  %p469_p1 = scmp.lt.u32.totalorder %s465_s18, %s753_s0 }
   0x8   :  { %p471_p2 = pnand %p469_p1, %p466_p0 }
   0xa   :  { %474 = shalt.err (!%p471_p2)
}
   0xb   :  { %s475_s23 = scalar_lea.vmem %s20_s13, 256  ;;  %p480_p4 = scmp.lt.s32.totalorder %s20_s13, %s20_s13 }
   0xc   :  { %p476_p3 = scmp.ne.s32.totalorder %s20_s13, %s475_s23  ;;  %p481_p5 = scmp.lt.s32.totalorder %s475_s23, %s475_s23 }
   0xe   :  { %p482_p6 = por %p481_p5, %p480_p4 }
  0x10   :  { %p483_p7 = pnand %p482_p6, %p476_p3 }
  0x12   :  { %486 = shalt.err (!%p483_p7)
}
  0x13   :  { %22 = dma.hbm_to_vmem [thread:$0]  %s753_s0, 256, %s20_s13, [#allocation3]  }
  0x14   :  { %s487_s28 = scalar_lea.hbm %s754_s1, 4096 }
  0x15   :  { %p488_p8 = scmp.ne.s32.totalorder %s754_s1, %s487_s28  ;;  %p491_p9 = scmp.lt.u32.totalorder %s487_s28, %s754_s1 }
  0x17   :  { %p493_p10 = pnand %p491_p9, %p488_p8 }
  0x19   :  { %496 = shalt.err (!%p493_p10)
}
  0x1a   :  { %s497_s6 = scalar_lea.vmem %s595_s15, 4096  ;;  %p502_p12 = scmp.lt.s32.totalorder %s595_s15, %s595_s15 }
  0x1b   :  { %p498_p11 = scmp.ne.s32.totalorder %s595_s15, %s497_s6  ;;  %p503_p13 = scmp.lt.s32.totalorder %s497_s6, %s497_s6 }
  0x1d   :  { %p504_p0 = por %p503_p13, %p502_p12 }
  0x1f   :  { %p505_p1 = pnand %p504_p0, %p498_p11 }
  0x21   :  { %508 = shalt.err (!%p505_p1)
}
  0x22   :  { %s563_s0 = smov 128   ;;  %s564_s7 = smov 8  }
  0x23   :  { %34 = dma.hbm_to_vmem [thread:$0]  %s754_s1, 4096, %s595_s15, [#allocation6], %s563_s0, %s563_s0, %s564_s7  }
  0x24   :  { %553 = dma.done.wait [#allocation3], 256  }
  0x25   :  { %554 = vsyncadd [#allocation3], 4294967040 }
  0x26   :  { %555 = dma.done.wait [#allocation6], 4096  }
  0x27   :  { %556 = vsyncadd [#allocation6], 4294963200  ;;  %vm46_vm0 = vcmask 130048   ;;  %v41_v0 = vld [vmem:[#allocation2] sm:$0xff]  ;;  %s565_s10 = smov 96   ;;  %s566_s11 = smov 80  }
  0x28   :  { %v47_v1 = vsel %vm46_vm0, %v41_v0, -inf  ;;  %70 = vrot.lane.b32.xlu1 %v41_v0, %s565_s10  ;;  %s567_s12 = smov 64   ;;  %s568_s13 = smov 32   ;;  %v42_v2 = vld [vmem:[#allocation2 + $0x8] sm:$0xff]  ;;  %v267_v9 = vld [vmem:[#allocation5 + $0x80] sm:$0xff]  ;;  %v268_v10 = vld [vmem:[#allocation5 + $0x88] sm:$0xff] }
  0x29   :  { %48 = vmax.index.xlane.f32.xlu0 %v47_v1  ;;  %s569_s14 = smov 112   ;;  %s570_s1 = smov 48   ;;  %v148_v3 = vsel %vm46_vm0, %v42_v2, -inf  ;;  %v251_v11 = vld [vmem:[#allocation5] sm:$0xff]  ;;  %v419_v12 = vpack.c.bf16 %v268_v10, %v267_v9  ;;  %v252_v13 = vld [vmem:[#allocation5 + $0x8] sm:$0xff]  ;;  %v269_v31 = vld [vmem:[#allocation5 + $0x90] sm:$0xff] }
  0x2a   :  { %s571_s15 = smov 16   ;;  %v421_v14 = vpack.c.bf16 %v252_v13, %v251_v11  ;;  %v270_v32 = vld [vmem:[#allocation5 + $0x98] sm:$0xff]  ;;  %v253_v35 = vld [vmem:[#allocation5 + $0x10] sm:$0xff]  ;;  %v271_v41 = vld [vmem:[#allocation5 + $0xa0] sm:$0xff]  ;;  %s573_s16 = smov [#allocation8]  }
  0x2b   :  { %420 = vmatprep.subr.bf16.mxu0 %v419_v12  ;;  %v423_v34 = vpack.c.bf16 %v270_v32, %v269_v31  ;;  %v254_v36 = vld [vmem:[#allocation5 + $0x18] sm:$0xff]  ;;  %v272_v42 = vld [vmem:[#allocation5 + $0xa8] sm:$0xff]  ;;  %v255_v46 = vld [vmem:[#allocation5 + $0x20] sm:$0xff]  ;;  %s370_s17 = sshll.u32 %s573_s16, 4  ;;  %s371_s17 = int_to_ptr.vmem [resolvable:$true] %s370_s17 }
  0x2c   :  { %83 = vrot.lane.b32.xlu1 %v41_v0, %s566_s11  ;;  %422 = vmatpush3.bf16.msra.mxu0 %v421_v14  ;;  %v425_v38 = vpack.c.bf16 %v254_v36, %v253_v35  ;;  %v427_v45 = vpack.c.bf16 %v272_v42, %v271_v41  ;;  %v256_v47 = vld [vmem:[#allocation5 + $0x28] sm:$0xff]  ;;  %v273_v51 = vld [vmem:[#allocation5 + $0xb0] sm:$0xff]  ;;  %v274_v52 = vld [vmem:[#allocation5 + $0xb8] sm:$0xff]  ;;  %s509_s18 = scalar_lea.vmem %s371_s17, 128  ;;  %p514_p3 = scmp.lt.s32.totalorder %s371_s17, %s371_s17 }
  0x2d   :  { %424 = vmatprep.subr.bf16.mxu0 %v423_v34  ;;  %v429_v49 = vpack.c.bf16 %v256_v47, %v255_v46  ;;  %v431_v53 = vpack.c.bf16 %v274_v52, %v273_v51  ;;  %v257_v54 = vld [vmem:[#allocation5 + $0x30] sm:$0xff]  ;;  %v258_v55 = vld [vmem:[#allocation5 + $0x38] sm:$0xff]  ;;  %v275_v57 = vld [vmem:[#allocation5 + $0xc0] sm:$0xff]  ;;  %p510_p2 = scmp.ne.s32.totalorder %s371_s17, %s509_s18  ;;  %p515_p4 = scmp.lt.s32.totalorder %s509_s18, %s509_s18 }
  0x2e   :  { %v433_v56 = vpack.c.bf16 %v258_v55, %v257_v54  ;;  %v276_v58 = vld [vmem:[#allocation5 + $0xc8] sm:$0xff]  ;;  %v259_v60 = vld [vmem:[#allocation5 + $0x40] sm:$0xff]  ;;  %v277_v63 = vld [vmem:[#allocation5 + $0xd0] sm:$0xff] }
  0x2f   :  { %v435_v59 = vpack.c.bf16 %v276_v58, %v275_v57  ;;  %v260_v61 = vld [vmem:[#allocation5 + $0x48] sm:$0xff]  ;;  %v281_v11 = vld [vmem:[#allocation5 + $0xf0] sm:$0xff]  ;;  %v282_v12 = vld [vmem:[#allocation5 + $0xf8] sm:$0xff]  ;;  %p516_p5 = por %p515_p4, %p514_p3 }
  0x30   :  { %96 = vrot.lane.b32.xlu1 %v41_v0, %s567_s12  ;;  %426 = vmatpush3.bf16.msra.mxu0 %v425_v38  ;;  %v437_v62 = vpack.c.bf16 %v260_v61, %v259_v60  ;;  %v264_v9 = vld [vmem:[#allocation5 + $0x68] sm:$0xff]  ;;  %v447_v13 = vpack.c.bf16 %v282_v12, %v281_v11  ;;  %v265_v14 = vld [vmem:[#allocation5 + $0x70] sm:$0xff] }
  0x31   :  { %428 = vmatprep.subr.bf16.mxu0 %v427_v45  ;;  %p517_p6 = pnand %p516_p5, %p510_p2 }
  0x34   :  { %122 = vrot.lane.b32.xlu1 %v41_v0, %s568_s13  ;;  %430 = vmatpush3.bf16.msra.mxu0 %v429_v49 }
  0x35   :  { %432 = vmatprep.subr.bf16.mxu0 %v431_v53 }
  0x38   :  { %159 = vrot.lane.b32.xlu1 %v42_v2, %s569_s14  ;;  %434 = vmatpush3.bf16.msra.mxu0 %v433_v56 }
  0x39   :  { %436 = vmatprep.subr.bf16.mxu0 %v435_v59 }
  0x3c   :  { %185 = vrot.lane.b32.xlu1 %v42_v2, %s566_s11  ;;  %438 = vmatpush3.bf16.msra.mxu0 %v437_v62 }
  0x3f   :  { %57 = vrot.lane.b32.xlu0 %v41_v0, %s569_s14 }
  0x40   :  { %211 = vrot.lane.b32.xlu1 %v42_v2, %s570_s1 }
  0x43   :  { %109 = vrot.lane.b32.xlu0 %v41_v0, %s570_s1 }
  0x44   :  { %237 = vrot.lane.b32.xlu1 %v42_v2, %s571_s15 }
  0x47   :  { %135 = vrot.lane.b32.xlu0 %v41_v0, %s571_s15  ;;  %v278_v0 = vld [vmem:[#allocation5 + $0xd8] sm:$0xff] }
  0x48   :  { %v439_v1 = vpack.c.bf16 %v278_v0, %v277_v63 }
  0x4a   :  { %440 = vmatprep.subr.bf16.mxu0 %v439_v1 }
  0x4b   :  { %172 = vrot.lane.b32.xlu0 %v42_v2, %s565_s10 }
  0x4f   :  { %198 = vrot.lane.b32.xlu0 %v42_v2, %s567_s12 }
  0x53   :  { %224 = vrot.lane.b32.xlu0 %v42_v2, %s568_s13  ;;  %v261_v2 = vld [vmem:[#allocation5 + $0x50] sm:$0xff] }
  0x72   :  { %149 = vmax.index.xlane.f32.xlu0 %v148_v3  ;;  %v262_v3 = vld [vmem:[#allocation5 + $0x58] sm:$0xff] }
  0x9a   :  { %v71_v4 = vpop.permute.xlu1 %70 }
  0x9b   :  { %v73_v5 = vsel %vm46_vm0, %v71_v4, -inf  ;;  %v441_v4 = vpack.c.bf16 %v262_v3, %v261_v2 }
  0x9c   :  { %74 = vmax.index.xlane.f32.xlu0 %v73_v5  ;;  %v279_v5 = vld [vmem:[#allocation5 + $0xe0] sm:$0xff] }
  0x9d   :  { %442 = vmatpush3.bf16.msra.mxu0 %v441_v4 }
  0x9e   :  { %v84_v6 = vpop.permute.xlu1 %83 }
  0x9f   :  { %v86_v21 = vsel %vm46_vm0, %v84_v6, -inf  ;;  %v280_v6 = vld [vmem:[#allocation5 + $0xe8] sm:$0xff] }
  0xa2   :  { %v97_v7 = vpop.permute.xlu1 %96 }
  0xa3   :  { %v99_v8 = vsel %vm46_vm0, %v97_v7, -inf  ;;  %v443_v7 = vpack.c.bf16 %v280_v6, %v279_v5 }
  0xa4   :  { %100 = vmax.index.xlane.f32.xlu0 %v99_v8  ;;  %v263_v8 = vld [vmem:[#allocation5 + $0x60] sm:$0xff] }
  0xa5   :  { %v445_v10 = vpack.c.bf16 %v264_v9, %v263_v8  ;;  %444 = vmatprep.subr.bf16.mxu0 %v443_v7 }
  0xa6   :  { %v123_v16 = vpop.permute.xlu1 %122 }
  0xa7   :  { %v125_v23 = vsel %vm46_vm0, %v123_v16, -inf  ;;  %446 = vmatpush3.bf16.msra.mxu0 %v445_v10  ;;  %v266_v16 = vld [vmem:[#allocation5 + $0x78] sm:$0xff] }
  0xa8   :  { %448 = vmatprep.subr.bf16.mxu0 %v447_v13 }
  0xaa   :  { %v160_v19 = vpop.permute.xlu1 %159 }
  0xab   :  { %v162_v27 = vsel %vm46_vm0, %v160_v19, -inf }
  0xae   :  { %v186_v25 = vpop.permute.xlu1 %185 }
  0xaf   :  { %v188_v33 = vsel %vm46_vm0, %v186_v25, -inf  ;;  %v572_v25 = vmov 0.0  }
  0xb2   :  { %v212_v30 = vpop.permute.xlu1 %211 }
  0xb3   :  { %v214_v40 = vsel %vm46_vm0, %v212_v30, -inf }
  0xb6   :  { %v630_v15 = vpop.xlane.xlu0 %48  ;;  %v238_v44 = vpop.permute.xlu1 %237 }
  0xb7   :  { %v240_v50 = vsel %vm46_vm0, %v238_v44, -inf }
  0xba   :  { %v58_v17 = vpop.permute.xlu0 %57 }
  0xbb   :  { %v60_v18 = vsel %vm46_vm0, %v58_v17, -inf  ;;  %v449_v17 = vpack.c.bf16 %v266_v16, %v265_v14 }
  0xbc   :  { %61 = vmax.index.xlane.f32.xlu1 %v60_v18  ;;  %v43_v18 = vlaneseq }
  0xbd   :  { %450 = vmatpush3.bf16.msra.mxu0 %v449_v17 }
  0xbe   :  { %v110_v20 = vpop.permute.xlu0 %109 }
  0xbf   :  { %v112_v22 = vsel %vm46_vm0, %v110_v20, -inf  ;;  %v646_v20 = vand.u32 127, %v43_v18 }
  0xc0   :  { %87 = vmax.index.xlane.f32.xlu1 %v86_v21  ;;  %113 = vmax.index.xlane.f32.xlu0 %v112_v22 }
  0xc1   :  { %v649_v21 = vadd.s32 128, %v646_v20  ;;  %vm50_vm1 = vcmp.eq.s32.totalorder %v646_v20, 0  ;;  %vm52_vm2 = vcmp.eq.s32.totalorder %v646_v20, %v630_v15  ;;  %vm63_vm4 = vcmp.eq.s32.totalorder %v646_v20, 1 }
  0xc2   :  { %v136_v24 = vpop.permute.xlu0 %135  ;;  %vm76_vm5 = vcmp.eq.s32.totalorder %v646_v20, 2  ;;  %vm89_vm6 = vcmp.eq.s32.totalorder %v646_v20, 3  ;;  %vm102_vm7 = vcmp.eq.s32.totalorder %v646_v20, 4  ;;  %vm115_vm8 = vcmp.eq.s32.totalorder %v646_v20, 5 }
  0xc3   :  { %v138_v26 = vsel %vm46_vm0, %v136_v24, -inf  ;;  %vm53_vm3 = vcmp.eq.s32.totalorder %v649_v21, %v630_v15  ;;  %v51_v24 = vsel %vm50_vm1, %v630_v15, 0  ;;  %vm128_vm9 = vcmp.eq.s32.totalorder %v646_v20, 6 }
  0xc4   :  { %126 = vmax.index.xlane.f32.xlu0 %v125_v23  ;;  %139 = vmax.index.xlane.f32.xlu1 %v138_v26  ;;  %v54_v26 = vsel %vm52_vm2, 1.0, %v572_v25  ;;  %vm141_vm10 = vcmp.eq.s32.totalorder %v646_v20, 7  ;;  %vm151_vm11 = vcmp.eq.s32.totalorder %v646_v20, 8  ;;  %vm165_vm12 = vcmp.eq.s32.totalorder %v646_v20, 9 }
  0xc5   :  { %vm178_vm15 = vcmp.eq.s32.totalorder %v646_v20, 10 }
  0xc6   :  { %v173_v28 = vpop.permute.xlu0 %172 }
  0xc7   :  { %v175_v29 = vsel %vm46_vm0, %v173_v28, -inf }
  0xc8   :  { %163 = vmax.index.xlane.f32.xlu1 %v162_v27  ;;  %176 = vmax.index.xlane.f32.xlu0 %v175_v29  ;;  %v55_v27 = vsel %vm53_vm3, 1.0, %v572_v25 }
  0xca   :  { %v199_v37 = vpop.permute.xlu0 %198 }
  0xcb   :  { %v201_v39 = vsel %vm46_vm0, %v199_v37, -inf }
  0xcc   :  { %189 = vmax.index.xlane.f32.xlu1 %v188_v33  ;;  %202 = vmax.index.xlane.f32.xlu0 %v201_v39 }
  0xce   :  { %v225_v43 = vpop.permute.xlu0 %224 }
  0xcf   :  { %v227_v48 = vsel %vm46_vm0, %v225_v43, -inf }
  0xd0   :  { %215 = vmax.index.xlane.f32.xlu1 %v214_v40  ;;  %228 = vmax.index.xlane.f32.xlu0 %v227_v48 }
  0xd4   :  { %241 = vmax.index.xlane.f32.xlu1 %v240_v50 }
  0xff   :  { %v644_v19 = vpop.xlane.xlu0 %149 }
 0x100   :  { %v153_v15 = vadd.s32 128, %v644_v19 }
 0x129   :  { %v75_v22 = vpop.xlane.xlu0 %74 }
 0x12a   :  { %v78_v28 = vadd.s32 32, %v75_v22 }
 0x12c   :  { %vm79_vm1 = vcmp.eq.s32.totalorder %v646_v20, %v78_v28  ;;  %vm80_vm2 = vcmp.eq.s32.totalorder %v649_v21, %v78_v28 }
 0x131   :  { %v101_v23 = vpop.xlane.xlu0 %100 }
 0x132   :  { %v104_v32 = vadd.s32 64, %v101_v23 }
 0x134   :  { %vm105_vm3 = vcmp.eq.s32.totalorder %v646_v20, %v104_v32 }
 0x149   :  { %v62_v29 = vpop.xlane.xlu1 %61 }
 0x14a   :  { %v64_v30 = vsel %vm63_vm4, %v62_v29, %v51_v24  ;;  %v65_v31 = vadd.s32 16, %v62_v29  ;;  %vm106_vm4 = vcmp.eq.s32.totalorder %v649_v21, %v104_v32 }
 0x14b   :  { %v77_v36 = vsel %vm76_vm5, %v75_v22, %v64_v30 }
 0x14c   :  { %vm66_vm13 = vcmp.eq.s32.totalorder %v646_v20, %v65_v31  ;;  %vm67_vm14 = vcmp.eq.s32.totalorder %v649_v21, %v65_v31 }
 0x14d   :  { %v68_v33 = vsel %vm66_vm13, 1.0, %v54_v26  ;;  %v69_v34 = vsel %vm67_vm14, 1.0, %v55_v27  ;;  %v88_v35 = vpop.xlane.xlu1 %87  ;;  %v114_v37 = vpop.xlane.xlu0 %113 }
 0x14e   :  { %v90_v38 = vsel %vm89_vm6, %v88_v35, %v77_v36  ;;  %v91_v39 = vadd.s32 48, %v88_v35  ;;  %v81_v40 = vsel %vm79_vm1, 1.0, %v68_v33  ;;  %v117_v42 = vadd.s32 80, %v114_v37 }
 0x14f   :  { %v103_v41 = vsel %vm102_vm7, %v101_v23, %v90_v38  ;;  %v82_v43 = vsel %vm80_vm2, 1.0, %v69_v34  ;;  %vm191_vm1 = vcmp.eq.s32.totalorder %v646_v20, 11  ;;  %vm154_vm2 = vcmp.eq.s32.totalorder %v646_v20, %v153_v15 }
 0x150   :  { %vm92_vm13 = vcmp.eq.s32.totalorder %v646_v20, %v91_v39  ;;  %vm93_vm5 = vcmp.eq.s32.totalorder %v649_v21, %v91_v39  ;;  %v116_v44 = vsel %vm115_vm8, %v114_v37, %v103_v41  ;;  %vm118_vm6 = vcmp.eq.s32.totalorder %v646_v20, %v117_v42 }
 0x151   :  { %v94_v45 = vsel %vm92_vm13, 1.0, %v81_v40  ;;  %v95_v46 = vsel %vm93_vm5, 1.0, %v82_v43  ;;  %vm119_vm14 = vcmp.eq.s32.totalorder %v649_v21, %v117_v42  ;;  %v140_v47 = vpop.xlane.xlu1 %139  ;;  %v127_v48 = vpop.xlane.xlu0 %126 }
 0x152   :  { %v107_v49 = vsel %vm105_vm3, 1.0, %v94_v45  ;;  %v108_v50 = vsel %vm106_vm4, 1.0, %v95_v46  ;;  %v143_v51 = vadd.s32 112, %v140_v47  ;;  %v129_v52 = vsel %vm128_vm9, %v127_v48, %v116_v44 }
 0x153   :  { %v120_v53 = vsel %vm118_vm6, 1.0, %v107_v49  ;;  %v121_v54 = vsel %vm119_vm14, 1.0, %v108_v50  ;;  %v130_v55 = vadd.s32 96, %v127_v48  ;;  %v142_v56 = vsel %vm141_vm10, %v140_v47, %v129_v52 }
 0x154   :  { %vm144_vm7 = vcmp.eq.s32.totalorder %v646_v20, %v143_v51  ;;  %vm145_vm8 = vcmp.eq.s32.totalorder %v649_v21, %v143_v51  ;;  %v152_v57 = vsel %vm151_vm11, %v644_v19, %v142_v56  ;;  %vm155_vm9 = vcmp.eq.s32.totalorder %v649_v21, %v153_v15 }
 0x155   :  { %vm131_vm3 = vcmp.eq.s32.totalorder %v646_v20, %v130_v55  ;;  %vm132_vm4 = vcmp.eq.s32.totalorder %v649_v21, %v130_v55  ;;  %v164_v58 = vpop.xlane.xlu1 %163  ;;  %v177_v59 = vpop.xlane.xlu0 %176  ;;  %vm230_vm6 = vcmp.eq.s32.totalorder %v646_v20, 14 }
 0x156   :  { %v133_v60 = vsel %vm131_vm3, 1.0, %v120_v53  ;;  %v134_v61 = vsel %vm132_vm4, 1.0, %v121_v54  ;;  %v166_v62 = vsel %vm165_vm12, %v164_v58, %v152_v57  ;;  %v167_v63 = vadd.s32 144, %v164_v58 }
 0x157   :  { %v146_v0 = vsel %vm144_vm7, 1.0, %v133_v60  ;;  %v147_v1 = vsel %vm145_vm8, 1.0, %v134_v61  ;;  %v179_v2 = vsel %vm178_vm15, %v177_v59, %v166_v62  ;;  %v180_v3 = vadd.s32 160, %v177_v59 }
 0x158   :  { %v156_v4 = vsel %vm154_vm2, 1.0, %v146_v0  ;;  %v157_v5 = vsel %vm155_vm9, 1.0, %v147_v1  ;;  %vm168_vm10 = vcmp.eq.s32.totalorder %v646_v20, %v167_v63  ;;  %vm169_vm11 = vcmp.eq.s32.totalorder %v649_v21, %v167_v63 }
 0x159   :  { %v170_v6 = vsel %vm168_vm10, 1.0, %v156_v4  ;;  %v171_v7 = vsel %vm169_vm11, 1.0, %v157_v5  ;;  %vm181_vm13 = vcmp.eq.s32.totalorder %v646_v20, %v180_v3  ;;  %vm182_vm5 = vcmp.eq.s32.totalorder %v649_v21, %v180_v3  ;;  %v190_v8 = vpop.xlane.xlu1 %189  ;;  %v203_v9 = vpop.xlane.xlu0 %202 }
 0x15a   :  { %v192_v10 = vsel %vm191_vm1, %v190_v8, %v179_v2  ;;  %v193_v11 = vadd.s32 176, %v190_v8  ;;  %vm204_vm12 = vcmp.eq.s32.totalorder %v646_v20, 12  ;;  %v206_v12 = vadd.s32 192, %v203_v9 }
 0x15b   :  { %v183_v13 = vsel %vm181_vm13, 1.0, %v170_v6  ;;  %vm217_vm15 = vcmp.eq.s32.totalorder %v646_v20, 13  ;;  %v184_v14 = vsel %vm182_vm5, 1.0, %v171_v7  ;;  %v205_v17 = vsel %vm204_vm12, %v203_v9, %v192_v10 }
 0x15c   :  { %vm194_vm14 = vcmp.eq.s32.totalorder %v646_v20, %v193_v11  ;;  %vm195_vm7 = vcmp.eq.s32.totalorder %v649_v21, %v193_v11  ;;  %vm208_vm8 = vcmp.eq.s32.totalorder %v649_v21, %v206_v12  ;;  %vm207_vm1 = vcmp.eq.s32.totalorder %v646_v20, %v206_v12 }
 0x15d   :  { %v196_v16 = vsel %vm194_vm14, 1.0, %v183_v13  ;;  %v216_v18 = vpop.xlane.xlu1 %215  ;;  %v229_v19 = vpop.xlane.xlu0 %228  ;;  %v197_v22 = vsel %vm195_vm7, 1.0, %v184_v14  ;;  %vm243_vm2 = vcmp.eq.s32.totalorder %v646_v20, 15 }
 0x15e   :  { %v218_v23 = vsel %vm217_vm15, %v216_v18, %v205_v17  ;;  %v219_v24 = vadd.s32 208, %v216_v18  ;;  %v232_v25 = vadd.s32 224, %v229_v19  ;;  %v210_v26 = vsel %vm208_vm8, 1.0, %v197_v22 }
 0x15f   :  { %v231_v27 = vsel %vm230_vm6, %v229_v19, %v218_v23  ;;  %v209_v28 = vsel %vm207_vm1, 1.0, %v196_v16 }
 0x160   :  { %vm220_vm9 = vcmp.eq.s32.totalorder %v646_v20, %v219_v24  ;;  %vm221_vm3 = vcmp.eq.s32.totalorder %v649_v21, %v219_v24  ;;  %vm233_vm4 = vcmp.eq.s32.totalorder %v646_v20, %v232_v25  ;;  %vm234_vm10 = vcmp.eq.s32.totalorder %v649_v21, %v232_v25 }
 0x161   :  { %v242_v29 = vpop.xlane.xlu1 %241  ;;  %v223_v30 = vsel %vm221_vm3, 1.0, %v210_v26  ;;  %v222_v31 = vsel %vm220_vm9, 1.0, %v209_v28 }
 0x162   :  { %v244_v32 = vsel %vm243_vm2, %v242_v29, %v231_v27  ;;  %v245_v15 = vadd.s32 240, %v242_v29  ;;  %v236_v33 = vsel %vm234_vm10, 1.0, %v223_v30  ;;  %v235_v34 = vsel %vm233_vm4, 1.0, %v222_v31 }
 0x163   :  { %250 = vst.msk [vmem:[#allocation8] sm:$0xff] %vm46_vm0, %v244_v32 }
 0x164   :  { %vm246_vm11 = vcmp.eq.s32.totalorder %v646_v20, %v245_v15  ;;  %vm247_vm13 = vcmp.eq.s32.totalorder %v649_v21, %v245_v15 }
 0x165   :  { %v249_v35 = vsel %vm247_vm13, 1.0, %v236_v33  ;;  %v248_v36 = vsel %vm246_vm11, 1.0, %v235_v34 }
 0x166   :  { %347 = vmatprep.mubr.f32.mxu0 %v249_v35 }
 0x167   :  { %348 = vmatmul.mubr.f32.vlgmr.msra.gmra.mrb[0].mxu0 %v248_v36 }
 0x168   :  { %520 = shalt.err (!%p517_p6)
}
 0x169   :  { %s521_s21 = scalar_lea.hbm %s756_s3, 128 }
 0x16a   :  { %p522_p7 = scmp.ne.s32.totalorder %s756_s3, %s521_s21  ;;  %p525_p8 = scmp.lt.u32.totalorder %s521_s21, %s756_s3 }
 0x16c   :  { %p527_p9 = pnand %p525_p8, %p522_p7 }
 0x16e   :  { %530 = shalt.err (!%p527_p9)
}
 0x16f   :  { %373 = dma.vmem_to_hbm [thread:$0]  %s371_s17, 128, %s756_s3, [#allocation9]  }
 0x170   :  { %s574_s28 = smov [#allocation7]  }
 0x171   :  { %s360_s29 = sshll.u32 %s574_s28, 4  ;;  %s361_s29 = int_to_ptr.vmem [resolvable:$true] %s360_s29 }
 0x172   :  { %s531_s30 = scalar_lea.vmem %s361_s29, 128  ;;  %p536_p11 = scmp.lt.s32.totalorder %s361_s29, %s361_s29 }
 0x173   :  { %p532_p10 = scmp.ne.s32.totalorder %s361_s29, %s531_s30  ;;  %p537_p12 = scmp.lt.s32.totalorder %s531_s30, %s531_s30 }
 0x175   :  { %p538_p13 = por %p537_p12, %p536_p11 }
 0x177   :  { %p539_p0 = pnand %p538_p13, %p532_p10 }
 0x23a   :  { %v416_v20 = vpop.f32.mrb[0].mxu0 }
 0x23b   :  { %v417_v21 = vpop.f32.mrb[1].mxu0 }
 0x23c   :  { %v418_v37 = vadd.f32 %v417_v21, %v416_v20 }
 0x23e   :  { %353 = vst [vmem:[#allocation7] sm:$0xff] %v418_v37 }
 0x23f   :  { %542 = shalt.err (!%p539_p0)
}
 0x240   :  { %s543_s6 = scalar_lea.hbm %s755_s2, 128 }
 0x241   :  { %p544_p1 = scmp.ne.s32.totalorder %s755_s2, %s543_s6  ;;  %p547_p2 = scmp.lt.u32.totalorder %s543_s6, %s755_s2 }
 0x243   :  { %p549_p3 = pnand %p547_p2, %p544_p1 }
 0x245   :  { %552 = shalt.err (!%p549_p3)
}
 0x246   :  { %363 = dma.vmem_to_hbm [thread:$0]  %s361_s29, 128, %s755_s2, [#allocation4]  }
 0x247   :  { %557 = dma.done.wait [#allocation4], 128  }
 0x248   :  { %558 = vsyncadd [#allocation4], 4294967168 }
 0x249   :  { %559 = dma.done.wait [#allocation9], 128  }
 0x24a   :  { %560 = vsyncadd [#allocation9], 4294967168 }
 0x24b   :  { %380 = vsyncpa [#allocation3], 1 }
 0x24c   :  { %381 = vsyncpa [#allocation6], 1 }
 0x24d   :  { %382 = vsyncpa [#allocation4], 1 }
 0x24e   :  { %383 = vsyncpa [#allocation9], 1 }

</bundles_post_ra>
